<compile_context>
chip_gen: v7x
topology: tpu7x:2x2x1
jax: 0.10.0
libtpu: 0.0.40
codegen_flags: <defaults>
</compile_context>

<pallas_src>
import functools
import numpy as np
import jax
import jax.numpy as jnp
from jax.experimental import pallas as pl
from jax.experimental.pallas import tpu as pltpu

# ---------------- synthetic task configuration (stands in for opts/task_opts) --------------
NUM_CLASSES = 10                  # classes per perceptual variable (e.g. digits)
VARIABLES = ["x", "y"]            # sorted(classes.keys())
PROPOSITIONS = ["p_0", "p_1"]     # sorted(task_opts['mappings'].keys())
NUM_STATES = 4                    # len(task_opts['automaton']['states'])
ACCEPTING = [3]                   # task_opts['automaton']['accepting']
EPS = 1e-5                        # opts['eps']
HIDDEN = 32
IMG_C, IMG_H, IMG_W = 1, 16, 16
DIN = IMG_C * IMG_H * IMG_W       # 256

P = len(PROPOSITIONS)
S = NUM_STATES
NB = 2 * P + 1                    # pos-literal blocks + neg-literal blocks + unconditional block

# Automaton transition guards: (s0, s1) -> list of literals (prop_idx, sign).
TRANSITIONS = {
    (0, 1): [(0, +1)], (0, 0): [(0, -1)],
    (1, 2): [(1, +1)], (1, 1): [(1, -1)],
    (2, 3): [(0, +1)], (2, 2): [(0, -1)],
    (3, 3): [],
}

# ------------------------------- packed output slab layout ---------------------------------
COL_LX = 0
COL_LY = COL_LX + NUM_CLASSES     # 10
COL_P = COL_LY + NUM_CLASSES      # 20
COL_LOG = COL_P + P               # 22
COL_NEXT = COL_LOG + S            # 26
COL_ACC = COL_NEXT + S            # 30
USED_COLS = COL_ACC + 1           # 31
OUT_COLS = 32                     # narrow contiguous f32 slab (one linear write per row)

# ------------------------------ packed constants buffer layout -----------------------------
CONST_ROWS, CONST_COLS = 112, 32  # small f32 buffer; sub-blocks start on 8-row boundaries
_R_MSTACK = 0       # [NC, P*NC]   stacked proposition matrices
_R_REP = 16         # [NC, P*NC]   py replication matrix (py @ R == [py, py, ...])
_R_SUMP = 32        # [P*NC, P]    per-proposition block-sum
_R_ASTACK = 56      # [S, NB*S]    stacked transition basis matrices
_R_E = 64           # [P, NB*S]    literal gate (p_j coefficients per block)
_R_CONSTW = 72      # [1, NB*S]    literal gate constant term
_R_BSUM = 80        # [NB*S, S]    block-sum back to states
_R_ACC = 104        # [1, S]       accepting-state mask


def _build_prop_matrices():
    """M_j[cx, cy] = 1.0 iff proposition j holds for (x=cx, y=cy)."""
    m = np.zeros((P, NUM_CLASSES, NUM_CLASSES), np.float32)
    for cx in range(NUM_CLASSES):
        for cy in range(NUM_CLASSES):
            m[0, cx, cy] = 1.0 if cx == cy else 0.0                  # p_0 : x == y
            m[1, cx, cy] = 1.0 if cx + cy >= NUM_CLASSES else 0.0    # p_1 : x + y >= 10
    return m


def _build_constants():
    """Pack every symbolic constant into one f32 [CONST_ROWS, CONST_COLS] buffer."""
    nc = NUM_CLASSES
    M = _build_prop_matrices()

    m_stack = np.zeros((nc, P * nc), np.float32)
    rep = np.zeros((nc, P * nc), np.float32)
    sum_p = np.zeros((P * nc, P), np.float32)
    for j in range(P):
        m_stack[:, j * nc:(j + 1) * nc] = M[j]
        rep[:, j * nc:(j + 1) * nc] = np.eye(nc, dtype=np.float32)
        sum_p[j * nc:(j + 1) * nc, j] = 1.0

    # DFA transition tensor decomposed as T(p) = C + sum_j p_j*Apos_j + (1-p_j)*Aneg_j
    a_pos = np.zeros((P, S, S), np.float32)
    a_neg = np.zeros((P, S, S), np.float32)
    a_const = np.zeros((S, S), np.float32)
    for (s0i, s1i), lits in TRANSITIONS.items():
        # TODO(synk): guards with >1 literal need a product form; this task has <=1.
        assert len(lits) <= 1
        if not lits:
            a_const[s0i, s1i] += 1.0
        else:
            j, sign = lits[0]
            (a_pos if sign > 0 else a_neg)[j, s0i, s1i] += 1.0

    astack = np.concatenate([a_pos[j] for j in range(P)]
                            + [a_neg[j] for j in range(P)] + [a_const], axis=1)  # [S, NB*S]
    e_mat = np.zeros((P, NB * S), np.float32)
    const_w = np.zeros((1, NB * S), np.float32)
    for j in range(P):
        e_mat[j, j * S:(j + 1) * S] = 1.0             # pos block weight = p_j
        e_mat[j, (P + j) * S:(P + j + 1) * S] = -1.0  # neg block weight = 1 - p_j
        const_w[0, (P + j) * S:(P + j + 1) * S] = 1.0
    const_w[0, 2 * P * S:NB * S] = 1.0                # unconditional block weight = 1
    bsum = np.zeros((NB * S, S), np.float32)
    for k in range(NB):
        bsum[k * S:(k + 1) * S, :] = np.eye(S, dtype=np.float32)
    acc_row = np.zeros((1, S), np.float32)
    for a in ACCEPTING:
        acc_row[0, a] = 1.0

    buf = np.zeros((CONST_ROWS, CONST_COLS), np.float32)
    buf[_R_MSTACK:_R_MSTACK + nc, :P * nc] = m_stack
    buf[_R_REP:_R_REP + nc, :P * nc] = rep
    buf[_R_SUMP:_R_SUMP + P * nc, :P] = sum_p
    buf[_R_ASTACK:_R_ASTACK + S, :NB * S] = astack
    buf[_R_E:_R_E + P, :NB * S] = e_mat
    buf[_R_CONSTW:_R_CONSTW + 1, :NB * S] = const_w
    buf[_R_BSUM:_R_BSUM + NB * S, :S] = bsum
    buf[_R_ACC:_R_ACC + 1, :S] = acc_row
    return jnp.asarray(buf)


# ----------------------------------- fused forward kernel ----------------------------------
def _fused_kernel(x0_ref, x1_ref, w1x_ref, w1y_ref, w2x_ref, w2y_ref,
                  bias_ref, s0_ref, consts_ref, out_ref):
    f32 = jnp.float32
    bf16 = jnp.bfloat16
    nc = NUM_CLASSES

    # --- per-variable 2-layer MLP backbones (bf16 operands on MXU, f32 accumulate) ---
    b1x = bias_ref[:, 0:HIDDEN]
    b1y = bias_ref[:, HIDDEN:2 * HIDDEN]
    b2x = bias_ref[:, 2 * HIDDEN:2 * HIDDEN + nc]
    b2y = bias_ref[:, 2 * HIDDEN + nc:2 * HIDDEN + 2 * nc]

    def _mlp(x_ref, w1_ref, w2_ref, b1, b2):
        h = jnp.dot(x_ref[...].astype(bf16), w1_ref[...], preferred_element_type=f32) + b1
        h = jnp.maximum(h, 0.0)
        return jnp.dot(h.astype(bf16), w2_ref[...], preferred_element_type=f32) + b2

    lx = _mlp(x0_ref, w1x_ref, w2x_ref, b1x, b2x)                      # [Bt, NC]
    ly = _mlp(x1_ref, w1y_ref, w2y_ref, b1y, b2y)                      # [Bt, NC]

    def _softmax(z):
        z = z - jnp.max(z, axis=1, keepdims=True)
        e = jnp.exp(z)
        return e * pl.reciprocal(jnp.sum(e, axis=1, keepdims=True), approx=True)

    px = _softmax(lx)
    py = _softmax(ly)

    # --- constraint probabilities: p[b, j] = px[b] @ M_j @ py[b]^T (all lane-dense matmuls) ---
    m_stack = consts_ref[_R_MSTACK:_R_MSTACK + nc, :P * nc]
    rep = consts_ref[_R_REP:_R_REP + nc, :P * nc]
    sum_p = consts_ref[_R_SUMP:_R_SUMP + P * nc, :P]
    a = jnp.dot(px, m_stack, preferred_element_type=f32)               # [Bt, P*NC]
    py_rep = jnp.dot(py, rep, preferred_element_type=f32)              # [Bt, P*NC]
    p = jnp.dot(a * py_rep, sum_p, preferred_element_type=f32)         # [Bt, P]
    # Clip against approx-reciprocal drift so (1 - p_j) stays >= 0 in the gate below.
    p = jnp.clip(p, 0.0, 1.0)

    # --- DFA step: next_unnorm = s0 @ T(p), T(p) = C + sum_j p_j*Apos_j + (1-p_j)*Aneg_j ---
    astack = consts_ref[_R_ASTACK:_R_ASTACK + S, :NB * S]
    e_mat = consts_ref[_R_E:_R_E + P, :NB * S]
    const_w = consts_ref[_R_CONSTW:_R_CONSTW + 1, :NB * S]
    bsum = consts_ref[_R_BSUM:_R_BSUM + NB * S, :S]
    acc_row = consts_ref[_R_ACC:_R_ACC + 1, :S]

    basis = jnp.dot(s0_ref[...], astack, preferred_element_type=f32)   # [Bt, NB*S]
    gate = jnp.dot(p, e_mat, preferred_element_type=f32) + const_w     # [Bt, NB*S]
    unnorm = jnp.dot(basis * gate, bsum, preferred_element_type=f32)   # [Bt, S]

    denom = jnp.sum(unnorm, axis=1, keepdims=True) + EPS
    nxt = unnorm * pl.reciprocal(denom, approx=True)
    log_next = jnp.log(nxt + EPS)
    # Accepting prob from the NORMALIZED next-state distribution (single accepting state,
    # so noisy-OR == masked sum).
    acc = jnp.sum(nxt * acc_row, axis=1, keepdims=True)                # [Bt, 1]

    # --- direct column-slice stores into the narrow output slab (no epilogue concat) ---
    out_ref[:, COL_LX:COL_LX + nc] = lx
    out_ref[:, COL_LY:COL_LY + nc] = ly
    out_ref[:, COL_P:COL_P + P] = p
    out_ref[:, COL_LOG:COL_LOG + S] = log_next
    out_ref[:, COL_NEXT:COL_NEXT + S] = nxt
    out_ref[:, COL_ACC:COL_ACC + 1] = acc
    out_ref[:, USED_COLS:OUT_COLS] = jnp.zeros((lx.shape[0], OUT_COLS - USED_COLS), f32)


# ------------------------------------- batch tiling ----------------------------------------
def _pick_tile_b(b):
    if b <= 128 or b % 128 != 0:
        # Toy / ragged batches: one tile covering the whole batch (block dim == full array dim).
        # TODO(synk): ragged batch tiling not implemented.
        return b
    # >= 2 grid steps so the "parallel" batch axis lands on both v7x TensorCores; tile a
    # multiple of 128 (usually 256+), capped at 2048 to fit v5e's 16 MiB scoped-VMEM default
    # with double-buffered f32 input tiles.
    tile = min(2048, max(128, (b // 2) // 128 * 128))
    while b % tile:
        tile -= 128
    return tile


# --------------------------------------- forward -------------------------------------------
def scallop_e2e_forward(params, log_s0, s0, imgs):
    """Mirrors SequenceClassifier.forward(log_s0, s0, imgs) (true_labels/true_constraints=None)."""
    del log_s0  # TODO(synk): placeholder product-semiring DFA uses only s0.
    b = imgs[0].shape[0]
    # Row-major flatten of NCHW is a free metadata reshape; NO concat / dtype pass in the wrapper.
    x0 = imgs[0].reshape(b, DIN)
    x1 = imgs[1].reshape(b, DIN)

    tile_b = _pick_tile_b(b)
    grid = (b // tile_b,)

    slab = pl.pallas_call(
        _fused_kernel,
        out_shape=jax.ShapeDtypeStruct((b, OUT_COLS), jnp.float32),
        grid=grid,
        in_specs=[
            pl.BlockSpec((tile_b, DIN), lambda i: (i, 0)),             # image x (f32)
            pl.BlockSpec((tile_b, DIN), lambda i: (i, 0)),             # image y (f32)
            pl.BlockSpec(params["w1x"].shape, lambda i: (0, 0)),       # W1x (bf16)
            pl.BlockSpec(params["w1y"].shape, lambda i: (0, 0)),       # W1y (bf16)
            pl.BlockSpec(params["w2x"].shape, lambda i: (0, 0)),       # W2x (bf16)
            pl.BlockSpec(params["w2y"].shape, lambda i: (0, 0)),       # W2y (bf16)
            pl.BlockSpec(params["bias"].shape, lambda i: (0, 0)),      # packed biases
            pl.BlockSpec((tile_b, NUM_STATES), lambda i: (i, 0)),      # s0
            pl.BlockSpec(params["consts"].shape, lambda i: (0, 0)),    # packed symbolic consts
        ],
        out_specs=pl.BlockSpec((tile_b, OUT_COLS), lambda i: (i, 0)),
        compiler_params=pltpu.CompilerParams(dimension_semantics=("parallel",)),
    )(x0, x1, params["w1x"], params["w1y"], params["w2x"], params["w2y"],
      params["bias"], s0, params["consts"])

    # Split the packed output slab (cheap XLA slices, no extra kernel launches).
    logits_x = slab[:, COL_LX:COL_LX + NUM_CLASSES]
    logits_y = slab[:, COL_LY:COL_LY + NUM_CLASSES]
    p = slab[:, COL_P:COL_P + P]
    log_next = slab[:, COL_LOG:COL_LOG + S]
    next_state = slab[:, COL_NEXT:COL_NEXT + S]
    accepted = slab[:, COL_ACC]

    img_labels = [logits_x, logits_y]                      # sorted(VARIABLES) order
    constraint_labels = [p[:, j] for j in range(P)]        # sorted(PROPOSITIONS) order
    return img_labels, constraint_labels, log_next, next_state, accepted


# -------------------------------------- params ---------------------------------------------
def init_params(key):
    k1, k2, k3, k4 = jax.random.split(key, 4)
    w1x = jax.random.normal(k1, (DIN, HIDDEN), jnp.float32) * 0.05
    w2x = jax.random.normal(k2, (HIDDEN, NUM_CLASSES), jnp.float32) * 0.05
    w1y = jax.random.normal(k3, (DIN, HIDDEN), jnp.float32) * 0.05
    w2y = jax.random.normal(k4, (HIDDEN, NUM_CLASSES), jnp.float32) * 0.05
    # Packed biases: cols [0:H)=b1x, [H:2H)=b1y, [2H:2H+NC)=b2x, [2H+NC:2H+2NC)=b2y, rest pad.
    bias = jnp.zeros((1, 128), jnp.float32)
    return {
        "w1x": w1x.astype(jnp.bfloat16),
        "w1y": w1y.astype(jnp.bfloat16),
        "w2x": w2x.astype(jnp.bfloat16),
        "w2y": w2y.astype(jnp.bfloat16),
        "bias": bias,
        "consts": _build_constants(),
    }


if __name__ == "__main__":
    key = jax.random.PRNGKey(0)
    params = init_params(key)

    B = 8
    key, kx, ky = jax.random.split(key, 3)
    imgs = [
        jax.random.normal(kx, (B, IMG_C, IMG_H, IMG_W), jnp.float32),
        jax.random.normal(ky, (B, IMG_C, IMG_H, IMG_W), jnp.float32),
    ]
    s0 = jnp.zeros((B, NUM_STATES), jnp.float32).at[:, 0].set(1.0)
    log_s0 = jnp.log(s0 + EPS)

    fwd = jax.jit(functools.partial(scallop_e2e_forward, params))
    out = fwd(log_s0, s0, imgs)
    jax.block_until_ready(out)

    img_labels, constraints, log_next, next_state, accepted = out
    assert img_labels[0].shape == (B, NUM_CLASSES) and img_labels[1].shape == (B, NUM_CLASSES)
    assert constraints[0].shape == (B,) and len(constraints) == P
    assert log_next.shape == (B, NUM_STATES) and next_state.shape == (B, NUM_STATES)
    assert accepted.shape == (B,)
    assert bool(jnp.all(jnp.isfinite(log_next)))
    # Tolerances account for pl.reciprocal(approx=True) in softmax / DFA normalization.
    assert bool(jnp.allclose(jnp.sum(next_state, axis=1), 1.0, atol=5e-3))
    assert bool(jnp.all((accepted >= -5e-3) & (accepted <= 1.0 + 5e-3)))
    print("KERNEL_OK")
</pallas_src>

<mosaic_0001>
module attributes {stable_mosaic.version = 11 : i64} {
  func.func @_fused_kernel(%arg0: i32, %arg1: memref<8x256xf32, #tpu.memory_space<vmem>>, %arg2: memref<8x256xf32, #tpu.memory_space<vmem>>, %arg3: memref<256x32xbf16, #tpu.memory_space<vmem>>, %arg4: memref<256x32xbf16, #tpu.memory_space<vmem>>, %arg5: memref<32x10xbf16, #tpu.memory_space<vmem>>, %arg6: memref<32x10xbf16, #tpu.memory_space<vmem>>, %arg7: memref<1x128xf32, #tpu.memory_space<vmem>>, %arg8: memref<8x4xf32, #tpu.memory_space<vmem>>, %arg9: memref<112x32xf32, #tpu.memory_space<vmem>>, %arg10: memref<8x32xf32, #tpu.memory_space<vmem>>) attributes {dimension_semantics = [#tpu.dimension_semantics<parallel>], iteration_bounds = array<i64: 1>, scalar_prefetch = 0 : i64, scratch_operands = 0 : i64, tpu.core_type = #tpu.core_type<tc>, window_params = [{transform_indices = @transform_0, window_bounds = array<i64: 8, 256>}, {transform_indices = @transform_1, window_bounds = array<i64: 8, 256>}, {pipeline_mode = #tpu.pipeline_mode<synchronous>, transform_indices = @transform_2, window_bounds = array<i64: 256, 32>}, {pipeline_mode = #tpu.pipeline_mode<synchronous>, transform_indices = @transform_3, window_bounds = array<i64: 256, 32>}, {pipeline_mode = #tpu.pipeline_mode<synchronous>, transform_indices = @transform_4, window_bounds = array<i64: 32, 10>}, {pipeline_mode = #tpu.pipeline_mode<synchronous>, transform_indices = @transform_5, window_bounds = array<i64: 32, 10>}, {pipeline_mode = #tpu.pipeline_mode<synchronous>, transform_indices = @transform_6, window_bounds = array<i64: 1, 128>}, {transform_indices = @transform_7, window_bounds = array<i64: 8, 4>}, {pipeline_mode = #tpu.pipeline_mode<synchronous>, transform_indices = @transform_8, window_bounds = array<i64: 112, 32>}, {transform_indices = @transform_9, window_bounds = array<i64: 8, 32>}]} {
    %c0 = arith.constant 0 : index
    %c0_0 = arith.constant 0 : index
    %0 = vector.load %arg7[%c0, %c0_0] : memref<1x128xf32, #tpu.memory_space<vmem>>, vector<1x32xf32>
    %c0_1 = arith.constant 0 : index
    %c32 = arith.constant 32 : index
    %1 = vector.load %arg7[%c0_1, %c32] : memref<1x128xf32, #tpu.memory_space<vmem>>, vector<1x32xf32>
    %c0_2 = arith.constant 0 : index
    %c64 = arith.constant 64 : index
    %2 = vector.load %arg7[%c0_2, %c64] : memref<1x128xf32, #tpu.memory_space<vmem>>, vector<1x10xf32>
    %c0_3 = arith.constant 0 : index
    %c74 = arith.constant 74 : index
    %3 = vector.load %arg7[%c0_3, %c74] : memref<1x128xf32, #tpu.memory_space<vmem>>, vector<1x10xf32>
    %c0_4 = arith.constant 0 : index
    %c0_5 = arith.constant 0 : index
    %4 = vector.load %arg1[%c0_4, %c0_5] : memref<8x256xf32, #tpu.memory_space<vmem>>, vector<8x256xf32>
    %5 = arith.truncf %4 : vector<8x256xf32> to vector<8x256xbf16>
    %c0_6 = arith.constant 0 : index
    %c0_7 = arith.constant 0 : index
    %6 = vector.load %arg3[%c0_6, %c0_7] : memref<256x32xbf16, #tpu.memory_space<vmem>>, vector<256x32xbf16>
    %cst = arith.constant dense<0.000000e+00> : vector<8x32xf32>
    %7 = tpu.matmul %5, %6, %cst {dimension_numbers = #tpu.dot_dimension_numbers<[1], [0], [0], [1], [0, 0, 1, 1], [], []>} : vector<8x256xbf16>, vector<256x32xbf16>, vector<8x32xf32> -> vector<8x32xf32>
    %8 = vector.broadcast %0 : vector<1x32xf32> to vector<8x32xf32>
    %9 = arith.addf %7, %8 : vector<8x32xf32>
    %cst_8 = arith.constant 0.000000e+00 : f32
    %10 = vector.broadcast %cst_8 : f32 to vector<8x32xf32>
    %11 = arith.maximumf %9, %10 : vector<8x32xf32>
    %12 = arith.truncf %11 : vector<8x32xf32> to vector<8x32xbf16>
    %c0_9 = arith.constant 0 : index
    %c0_10 = arith.constant 0 : index
    %13 = vector.load %arg5[%c0_9, %c0_10] : memref<32x10xbf16, #tpu.memory_space<vmem>>, vector<32x10xbf16>
    %cst_11 = arith.constant dense<0.000000e+00> : vector<8x10xf32>
    %14 = tpu.matmul %12, %13, %cst_11 {dimension_numbers = #tpu.dot_dimension_numbers<[1], [0], [0], [1], [0, 0, 1, 1], [], []>} : vector<8x32xbf16>, vector<32x10xbf16>, vector<8x10xf32> -> vector<8x10xf32>
    %15 = vector.broadcast %2 : vector<1x10xf32> to vector<8x10xf32>
    %16 = arith.addf %14, %15 : vector<8x10xf32>
    %c0_12 = arith.constant 0 : index
    %c0_13 = arith.constant 0 : index
    %17 = vector.load %arg2[%c0_12, %c0_13] : memref<8x256xf32, #tpu.memory_space<vmem>>, vector<8x256xf32>
    %18 = arith.truncf %17 : vector<8x256xf32> to vector<8x256xbf16>
    %c0_14 = arith.constant 0 : index
    %c0_15 = arith.constant 0 : index
    %19 = vector.load %arg4[%c0_14, %c0_15] : memref<256x32xbf16, #tpu.memory_space<vmem>>, vector<256x32xbf16>
    %cst_16 = arith.constant dense<0.000000e+00> : vector<8x32xf32>
    %20 = tpu.matmul %18, %19, %cst_16 {dimension_numbers = #tpu.dot_dimension_numbers<[1], [0], [0], [1], [0, 0, 1, 1], [], []>} : vector<8x256xbf16>, vector<256x32xbf16>, vector<8x32xf32> -> vector<8x32xf32>
    %21 = vector.broadcast %1 : vector<1x32xf32> to vector<8x32xf32>
    %22 = arith.addf %20, %21 : vector<8x32xf32>
    %cst_17 = arith.constant 0.000000e+00 : f32
    %23 = vector.broadcast %cst_17 : f32 to vector<8x32xf32>
    %24 = arith.maximumf %22, %23 : vector<8x32xf32>
    %25 = arith.truncf %24 : vector<8x32xf32> to vector<8x32xbf16>
    %c0_18 = arith.constant 0 : index
    %c0_19 = arith.constant 0 : index
    %26 = vector.load %arg6[%c0_18, %c0_19] : memref<32x10xbf16, #tpu.memory_space<vmem>>, vector<32x10xbf16>
    %cst_20 = arith.constant dense<0.000000e+00> : vector<8x10xf32>
    %27 = tpu.matmul %25, %26, %cst_20 {dimension_numbers = #tpu.dot_dimension_numbers<[1], [0], [0], [1], [0, 0, 1, 1], [], []>} : vector<8x32xbf16>, vector<32x10xbf16>, vector<8x10xf32> -> vector<8x10xf32>
    %28 = vector.broadcast %3 : vector<1x10xf32> to vector<8x10xf32>
    %29 = arith.addf %27, %28 : vector<8x10xf32>
    %cst_21 = arith.constant dense<0xFF800000> : vector<8xf32>
    %30 = vector.multi_reduction <maximumf>, %16, %cst_21 [1] : vector<8x10xf32> to vector<8xf32>
    %31 = vector.shape_cast %30 : vector<8xf32> to vector<8x1xf32>
    %32 = vector.broadcast %31 : vector<8x1xf32> to vector<8x10xf32>
    %33 = arith.subf %16, %32 : vector<8x10xf32>
    %34 = math.exp %33 : vector<8x10xf32>
    %cst_22 = arith.constant dense<0.000000e+00> : vector<8xf32>
    %35 = vector.multi_reduction <add>, %34, %cst_22 [1] : vector<8x10xf32> to vector<8xf32>
    %36 = vector.shape_cast %35 : vector<8xf32> to vector<8x1xf32>
    %37 = tpu.reciprocal %36 {approx = true} : vector<8x1xf32> -> vector<8x1xf32>
    %38 = vector.broadcast %37 : vector<8x1xf32> to vector<8x10xf32>
    %39 = arith.mulf %34, %38 : vector<8x10xf32>
    %cst_23 = arith.constant dense<0xFF800000> : vector<8xf32>
    %40 = vector.multi_reduction <maximumf>, %29, %cst_23 [1] : vector<8x10xf32> to vector<8xf32>
    %41 = vector.shape_cast %40 : vector<8xf32> to vector<8x1xf32>
    %42 = vector.broadcast %41 : vector<8x1xf32> to vector<8x10xf32>
    %43 = arith.subf %29, %42 : vector<8x10xf32>
    %44 = math.exp %43 : vector<8x10xf32>
    %cst_24 = arith.constant dense<0.000000e+00> : vector<8xf32>
    %45 = vector.multi_reduction <add>, %44, %cst_24 [1] : vector<8x10xf32> to vector<8xf32>
    %46 = vector.shape_cast %45 : vector<8xf32> to vector<8x1xf32>
    %47 = tpu.reciprocal %46 {approx = true} : vector<8x1xf32> -> vector<8x1xf32>
    %48 = vector.broadcast %47 : vector<8x1xf32> to vector<8x10xf32>
    %49 = arith.mulf %44, %48 : vector<8x10xf32>
    %c0_25 = arith.constant 0 : index
    %c0_26 = arith.constant 0 : index
    %50 = vector.load %arg9[%c0_25, %c0_26] : memref<112x32xf32, #tpu.memory_space<vmem>>, vector<10x20xf32>
    %c16 = arith.constant 16 : index
    %c0_27 = arith.constant 0 : index
    %51 = vector.load %arg9[%c16, %c0_27] : memref<112x32xf32, #tpu.memory_space<vmem>>, vector<10x20xf32>
    %c32_28 = arith.constant 32 : index
    %c0_29 = arith.constant 0 : index
    %52 = vector.load %arg9[%c32_28, %c0_29] : memref<112x32xf32, #tpu.memory_space<vmem>>, vector<20x2xf32>
    %cst_30 = arith.constant dense<0.000000e+00> : vector<8x20xf32>
    %53 = tpu.matmul %39, %50, %cst_30 {dimension_numbers = #tpu.dot_dimension_numbers<[1], [0], [0], [1], [0, 0, 1, 1], [], []>} : vector<8x10xf32>, vector<10x20xf32>, vector<8x20xf32> -> vector<8x20xf32>
    %cst_31 = arith.constant dense<0.000000e+00> : vector<8x20xf32>
    %54 = tpu.matmul %49, %51, %cst_31 {dimension_numbers = #tpu.dot_dimension_numbers<[1], [0], [0], [1], [0, 0, 1, 1], [], []>} : vector<8x10xf32>, vector<10x20xf32>, vector<8x20xf32> -> vector<8x20xf32>
    %55 = arith.mulf %53, %54 : vector<8x20xf32>
    %cst_32 = arith.constant dense<0.000000e+00> : vector<8x2xf32>
    %56 = tpu.matmul %55, %52, %cst_32 {dimension_numbers = #tpu.dot_dimension_numbers<[1], [0], [0], [1], [0, 0, 1, 1], [], []>} : vector<8x20xf32>, vector<20x2xf32>, vector<8x2xf32> -> vector<8x2xf32>
    %cst_33 = arith.constant 0.000000e+00 : f32
    %cst_34 = arith.constant 1.000000e+00 : f32
    %57 = vector.broadcast %cst_33 : f32 to vector<8x2xf32>
    %58 = arith.maximumf %57, %56 : vector<8x2xf32>
    %59 = vector.broadcast %cst_34 : f32 to vector<8x2xf32>
    %60 = arith.minimumf %59, %58 : vector<8x2xf32>
    %c56 = arith.constant 56 : index
    %c0_35 = arith.constant 0 : index
    %61 = vector.load %arg9[%c56, %c0_35] : memref<112x32xf32, #tpu.memory_space<vmem>>, vector<4x20xf32>
    %c64_36 = arith.constant 64 : index
    %c0_37 = arith.constant 0 : index
    %62 = vector.load %arg9[%c64_36, %c0_37] : memref<112x32xf32, #tpu.memory_space<vmem>>, vector<2x20xf32>
    %c72 = arith.constant 72 : index
    %c0_38 = arith.constant 0 : index
    %63 = vector.load %arg9[%c72, %c0_38] : memref<112x32xf32, #tpu.memory_space<vmem>>, vector<1x20xf32>
    %c80 = arith.constant 80 : index
    %c0_39 = arith.constant 0 : index
    %64 = vector.load %arg9[%c80, %c0_39] : memref<112x32xf32, #tpu.memory_space<vmem>>, vector<20x4xf32>
    %c104 = arith.constant 104 : index
    %c0_40 = arith.constant 0 : index
    %65 = vector.load %arg9[%c104, %c0_40] : memref<112x32xf32, #tpu.memory_space<vmem>>, vector<1x4xf32>
    %c0_41 = arith.constant 0 : index
    %c0_42 = arith.constant 0 : index
    %66 = vector.load %arg8[%c0_41, %c0_42] : memref<8x4xf32, #tpu.memory_space<vmem>>, vector<8x4xf32>
    %cst_43 = arith.constant dense<0.000000e+00> : vector<8x20xf32>
    %67 = tpu.matmul %66, %61, %cst_43 {dimension_numbers = #tpu.dot_dimension_numbers<[1], [0], [0], [1], [0, 0, 1, 1], [], []>} : vector<8x4xf32>, vector<4x20xf32>, vector<8x20xf32> -> vector<8x20xf32>
    %cst_44 = arith.constant dense<0.000000e+00> : vector<8x20xf32>
    %68 = tpu.matmul %60, %62, %cst_44 {dimension_numbers = #tpu.dot_dimension_numbers<[1], [0], [0], [1], [0, 0, 1, 1], [], []>} : vector<8x2xf32>, vector<2x20xf32>, vector<8x20xf32> -> vector<8x20xf32>
    %69 = vector.broadcast %63 : vector<1x20xf32> to vector<8x20xf32>
    %70 = arith.addf %68, %69 : vector<8x20xf32>
    %71 = arith.mulf %67, %70 : vector<8x20xf32>
    %cst_45 = arith.constant dense<0.000000e+00> : vector<8x4xf32>
    %72 = tpu.matmul %71, %64, %cst_45 {dimension_numbers = #tpu.dot_dimension_numbers<[1], [0], [0], [1], [0, 0, 1, 1], [], []>} : vector<8x20xf32>, vector<20x4xf32>, vector<8x4xf32> -> vector<8x4xf32>
    %cst_46 = arith.constant dense<0.000000e+00> : vector<8xf32>
    %73 = vector.multi_reduction <add>, %72, %cst_46 [1] : vector<8x4xf32> to vector<8xf32>
    %74 = vector.shape_cast %73 : vector<8xf32> to vector<8x1xf32>
    %cst_47 = arith.constant 9.99999974E-6 : f32
    %75 = vector.broadcast %cst_47 : f32 to vector<8x1xf32>
    %76 = arith.addf %74, %75 : vector<8x1xf32>
    %77 = tpu.reciprocal %76 {approx = true} : vector<8x1xf32> -> vector<8x1xf32>
    %78 = vector.broadcast %77 : vector<8x1xf32> to vector<8x4xf32>
    %79 = arith.mulf %72, %78 : vector<8x4xf32>
    %cst_48 = arith.constant 9.99999974E-6 : f32
    %80 = vector.broadcast %cst_48 : f32 to vector<8x4xf32>
    %81 = arith.addf %79, %80 : vector<8x4xf32>
    %82 = math.log %81 : vector<8x4xf32>
    %83 = vector.broadcast %65 : vector<1x4xf32> to vector<8x4xf32>
    %84 = arith.mulf %79, %83 : vector<8x4xf32>
    %cst_49 = arith.constant dense<0.000000e+00> : vector<8xf32>
    %85 = vector.multi_reduction <add>, %84, %cst_49 [1] : vector<8x4xf32> to vector<8xf32>
    %86 = vector.shape_cast %85 : vector<8xf32> to vector<8x1xf32>
    %c0_50 = arith.constant 0 : index
    %c0_51 = arith.constant 0 : index
    %87 = vector.load %arg10[%c0_50, %c0_51] : memref<8x32xf32, #tpu.memory_space<vmem>>, vector<8x10xf32>
    tpu.vector_store %arg10[%c0_50, %c0_51], %16 {strides = array<i32>} : memref<8x32xf32, #tpu.memory_space<vmem>>, vector<8x10xf32>,
    %c0_52 = arith.constant 0 : index
    %c10 = arith.constant 10 : index
    %88 = vector.load %arg10[%c0_52, %c10] : memref<8x32xf32, #tpu.memory_space<vmem>>, vector<8x10xf32>
    tpu.vector_store %arg10[%c0_52, %c10], %29 {strides = array<i32>} : memref<8x32xf32, #tpu.memory_space<vmem>>, vector<8x10xf32>,
    %c0_53 = arith.constant 0 : index
    %c20 = arith.constant 20 : index
    %89 = vector.load %arg10[%c0_53, %c20] : memref<8x32xf32, #tpu.memory_space<vmem>>, vector<8x2xf32>
    tpu.vector_store %arg10[%c0_53, %c20], %60 {strides = array<i32>} : memref<8x32xf32, #tpu.memory_space<vmem>>, vector<8x2xf32>,
    %c0_54 = arith.constant 0 : index
    %c22 = arith.constant 22 : index
    %90 = vector.load %arg10[%c0_54, %c22] : memref<8x32xf32, #tpu.memory_space<vmem>>, vector<8x4xf32>
    tpu.vector_store %arg10[%c0_54, %c22], %82 {strides = array<i32>} : memref<8x32xf32, #tpu.memory_space<vmem>>, vector<8x4xf32>,
    %c0_55 = arith.constant 0 : index
    %c26 = arith.constant 26 : index
    %91 = vector.load %arg10[%c0_55, %c26] : memref<8x32xf32, #tpu.memory_space<vmem>>, vector<8x4xf32>
    tpu.vector_store %arg10[%c0_55, %c26], %79 {strides = array<i32>} : memref<8x32xf32, #tpu.memory_space<vmem>>, vector<8x4xf32>,
    %c0_56 = arith.constant 0 : index
    %c30 = arith.constant 30 : index
    %92 = vector.load %arg10[%c0_56, %c30] : memref<8x32xf32, #tpu.memory_space<vmem>>, vector<8x1xf32>
    tpu.vector_store %arg10[%c0_56, %c30], %86 {strides = array<i32>} : memref<8x32xf32, #tpu.memory_space<vmem>>, vector<8x1xf32>,
    %cst_57 = arith.constant 0.000000e+00 : f32
    %93 = vector.broadcast %cst_57 : f32 to vector<8x1xf32>
    %c0_58 = arith.constant 0 : index
    %c31 = arith.constant 31 : index
    %94 = vector.load %arg10[%c0_58, %c31] : memref<8x32xf32, #tpu.memory_space<vmem>>, vector<8x1xf32>
    tpu.vector_store %arg10[%c0_58, %c31], %93 {strides = array<i32>} : memref<8x32xf32, #tpu.memory_space<vmem>>, vector<8x1xf32>,
    return
  }
  func.func @transform_0(%arg0: i32) -> (i32, i32) {
    %c0_i32 = arith.constant 0 : i32
    %c0_i32_0 = arith.constant 0 : i32
    return %arg0, %c0_i32 : i32, i32
  }
  func.func @transform_1(%arg0: i32) -> (i32, i32) {
    %c0_i32 = arith.constant 0 : i32
    %c0_i32_0 = arith.constant 0 : i32
    return %arg0, %c0_i32 : i32, i32
  }
  func.func @transform_2(%arg0: i32) -> (i32, i32) {
    %c0_i32 = arith.constant 0 : i32
    %c0_i32_0 = arith.constant 0 : i32
    %c0_i32_1 = arith.constant 0 : i32
    return %c0_i32, %c0_i32_0 : i32, i32
  }
  func.func @transform_3(%arg0: i32) -> (i32, i32) {
    %c0_i32 = arith.constant 0 : i32
    %c0_i32_0 = arith.constant 0 : i32
    %c0_i32_1 = arith.constant 0 : i32
    return %c0_i32, %c0_i32_0 : i32, i32
  }
  func.func @transform_4(%arg0: i32) -> (i32, i32) {
    %c0_i32 = arith.constant 0 : i32
    %c0_i32_0 = arith.constant 0 : i32
    %c0_i32_1 = arith.constant 0 : i32
    return %c0_i32, %c0_i32_0 : i32, i32
  }
  func.func @transform_5(%arg0: i32) -> (i32, i32) {
    %c0_i32 = arith.constant 0 : i32
    %c0_i32_0 = arith.constant 0 : i32
    %c0_i32_1 = arith.constant 0 : i32
    return %c0_i32, %c0_i32_0 : i32, i32
  }
  func.func @transform_6(%arg0: i32) -> (i32, i32) {
    %c0_i32 = arith.constant 0 : i32
    %c0_i32_0 = arith.constant 0 : i32
    %c0_i32_1 = arith.constant 0 : i32
    return %c0_i32, %c0_i32_0 : i32, i32
  }
  func.func @transform_7(%arg0: i32) -> (i32, i32) {
    %c0_i32 = arith.constant 0 : i32
    %c0_i32_0 = arith.constant 0 : i32
    return %arg0, %c0_i32 : i32, i32
  }
  func.func @transform_8(%arg0: i32) -> (i32, i32) {
    %c0_i32 = arith.constant 0 : i32
    %c0_i32_0 = arith.constant 0 : i32
    %c0_i32_1 = arith.constant 0 : i32
    return %c0_i32, %c0_i32_0 : i32, i32
  }
  func.func @transform_9(%arg0: i32) -> (i32, i32) {
    %c0_i32 = arith.constant 0 : i32
    %c0_i32_0 = arith.constant 0 : i32
    return %arg0, %c0_i32 : i32, i32
  }
}

</mosaic_0001>

<bundles_post_ra>
// kernel: scallop_e2e_forward.1
= control target key start
LH: loop header
LB: loop body
LE: loop exit
PB: predicated region body
PF: predicated region fallthrough
CT: control target
= control target key end

     0   :  { %14 = vsyncpa [#allocation3], 0  ;;  %s1366_s30 = smov [#allocation2]   ;;  %s1646_s0 = inlined_call_operand.vmem [shape: f32[8,256], index: 0, kind: input, shape index: {}]   ;;  %s1647_s1 = inlined_call_operand.vmem [shape: f32[8,256], index: 1, kind: input, shape index: {}]   ;;  %s1648_s2 = inlined_call_operand.vmem [shape: bf16[256,32], index: 2, kind: input, shape index: {}]   ;;  %s1649_s3 = inlined_call_operand.vmem [shape: bf16[256,32], index: 3, kind: input, shape index: {}]   ;;  %s1650_s4 = inlined_call_operand.vmem [shape: bf16[32,10], index: 4, kind: input, shape index: {}]   ;;  %s1651_s5 = inlined_call_operand.vmem [shape: bf16[32,10], index: 5, kind: input, shape index: {}]   ;;  %s1652_s6 = inlined_call_operand.vmem [shape: f32[1,128], index: 6, kind: input, shape index: {}]   ;;  %s1653_s7 = inlined_call_operand.vmem [shape: f32[8,4], index: 7, kind: input, shape index: {}]   ;;  %s1654_s8 = inlined_call_operand.hbm [shape: f32[112,32], index: 8, kind: input, shape index: {}]   ;;  %s1655_s9 = inlined_call_operand.vmem [shape: f32[8,32], index: 9, kind: output, shape index: {}]  }
   0x1   :  { %s36_s10 = sshll.u32 %s1366_s30, 4  ;;  %s1342_s13 = scalar_lea.hbm %s1654_s8, 1792  ;;  %s37_s10 = int_to_ptr.vmem [resolvable:$true] %s36_s10 }
   0x2   :  { %p1343_p0 = scmp.ne.s32.totalorder %s1654_s8, %s1342_s13  ;;  %p1346_p1 = scmp.lt.u32.totalorder %s1342_s13, %s1654_s8 }
   0x4   :  { %p1348_p2 = pnand %p1346_p1, %p1343_p0 }
   0x6   :  { %1351 = shalt.err (!%p1348_p2)
}
   0x7   :  { %s1352_s18 = scalar_lea.vmem %s37_s10, 1792  ;;  %p1357_p4 = scmp.lt.s32.totalorder %s37_s10, %s37_s10 }
   0x8   :  { %p1353_p3 = scmp.ne.s32.totalorder %s37_s10, %s1352_s18  ;;  %p1358_p5 = scmp.lt.s32.totalorder %s1352_s18, %s1352_s18 }
   0xa   :  { %p1359_p6 = por %p1358_p5, %p1357_p4 }
   0xc   :  { %p1360_p7 = pnand %p1359_p6, %p1353_p3 }
   0xe   :  { %1363 = shalt.err (!%p1360_p7)
}
   0xf   :  { %s1367_s19 = smov 128   ;;  %s1368_s20 = smov 8  }
  0x10   :  { %42 = dma.hbm_to_vmem [thread:$0]  %s1654_s8, 1792, %s37_s10, [#allocation3], %s1367_s19, %s1367_s19, %s1368_s20  }
  0x11   :  { %1364 = dma.done.wait [#allocation3], 1792  }
  0x12   :  { %1365 = vsyncadd [#allocation3], 4294965504  ;;  %v1294_v0 = vld [vmem:[%s1648_s2 + $0x40] sm:$0xff]   ;;  %v1296_v2 = vld [vmem:[%s1648_s2 + $0x48] sm:$0xff]   ;;  %v1369_v21 = vmov 0.0   ;;  %vm1370_vm0 = vmmov 0  }
  0x13   :  { %v1295_v1 = vld [vmem:[%s1648_s2] sm:$0xff]   ;;  %1140 = vmatprep.subr.bf16.mxu0 %v1294_v0  ;;  %v1297_v3 = vld [vmem:[%s1648_s2 + $0x8] sm:$0xff]   ;;  %v1298_v4 = vld [vmem:[%s1648_s2 + $0x50] sm:$0xff]   ;;  %1208 = vmatprep.subr.bf16.mxu1 %v1369_v21  ;;  %s1371_s21 = smov 96   ;;  %s1373_s22 = smov 64   ;;  %vm247_vm1 = vcmask 261120  }
  0x14   :  { %1141 = vmatpush3.bf16.msra.mxu0 %v1295_v1  ;;  %v1299_v5 = vld [vmem:[%s1648_s2 + $0x10] sm:$0xff]   ;;  %v1300_v6 = vld [vmem:[%s1648_s2 + $0x58] sm:$0xff]   ;;  %v1302_v8 = vld [vmem:[%s1648_s2 + $0x60] sm:$0xff]   ;;  %1212 = vmatprep.mubr.msk.bf16.mxu1 %vm1370_vm0, %v1369_v21  ;;  %vm530_vm2 = vcmask 80896   ;;  %vm563_vm3 = vcmask 1041408   ;;  %vm1375_vm4 = vmmov 1  }
  0x15   :  { %1142 = vmatprep.subr.bf16.mxu0 %v1296_v2  ;;  %v1301_v7 = vld [vmem:[%s1648_s2 + $0x18] sm:$0xff]   ;;  %v1303_v9 = vld [vmem:[%s1648_s2 + $0x20] sm:$0xff]   ;;  %v1304_v10 = vld [vmem:[%s1648_s2 + $0x68] sm:$0xff]   ;;  %vm718_vm6 = vcmask 1043456   ;;  %vm714_vm7 = vcmask 162816   ;;  %vm802_vm8 = vcmask 31744  }
  0x16   :  { %v49_v11 = vld [vmem:[%s1646_s0 + $0x8] sm:$0xff]  ;;  %v1306_v14 = vld [vmem:[%s1648_s2 + $0x70] sm:$0xff]   ;;  %v1308_v16 = vld [vmem:[%s1648_s2 + $0x78] sm:$0xff]   ;;  %vm883_vm9 = vcmask 15360   ;;  %s1377_s13 = smov 10   ;;  %vm1059_vm10 = vcmask 162896  }
  0x17   :  { %v1305_v12 = vld [vmem:[%s1648_s2 + $0x28] sm:$0xff]   ;;  %v51_v13 = vpack.c.bf16 %v49_v11, %v49_v11  ;;  %v1307_v15 = vld [vmem:[%s1648_s2 + $0x30] sm:$0xff]   ;;  %v1309_v17 = vld [vmem:[%s1648_s2 + $0x38] sm:$0xff]   ;;  %vm1064_vm11 = vcmask 179360   ;;  %s1378_s17 = smov 26   ;;  %vm1070_vm12 = vcmask 212144  }
  0x18   :  { %1143 = vmatpush3.bf16.msra.mxu0 %v1297_v3  ;;  %v48_v18 = vld [vmem:[%s1646_s0] sm:$0xff]  ;;  %v1311_v22 = vld [vmem:[%s1650_s4 + $0x8] sm:$0xff]   ;;  %v1316_v38 = vld [vmem:[%s1649_s3 + $0x50] sm:$0xff]   ;;  %s1379_s0 = smov 22   ;;  %vm1076_vm13 = vcmask 244944   ;;  %vm1078_vm14 = vcmask 253168  }
  0x19   :  { %1144 = vmatprep.subr.bf16.mxu0 %v1298_v4  ;;  %218 = vmatprep.mubr.bf16.mxu0 %v51_v13  ;;  %v50_v19 = vpack.c.bf16 %v48_v18, %v48_v18  ;;  %v1310_v20 = vld [vmem:[%s1650_s4] sm:$0xff]   ;;  %s1372_s4 = smov 54   ;;  %v292_v31 = vld [vmem:[%s1647_s1 + $0x8] sm:$0xff]  ;;  %v1317_v39 = vld [vmem:[%s1649_s3 + $0x10] sm:$0xff]   ;;  %vm1080_vm15 = vcmask 261368  }
  0x1a   :  { %1209 = vmatpush3.bf16.msra.mxu1 %v1310_v20  ;;  %v1312_v23 = vld [vmem:[%s1649_s3 + $0x40] sm:$0xff]   ;;  %v294_v34 = vpack.c.bf16 %v292_v31, %v292_v31  ;;  %v1314_v36 = vld [vmem:[%s1649_s3 + $0x48] sm:$0xff]   ;;  %v1318_v40 = vld [vmem:[%s1649_s3 + $0x58] sm:$0xff]  }
  0x1b   :  { %1210 = vmatprep.subr.bf16.mxu1 %v1369_v21  ;;  %v1087_v24 = vld [vmem:[%s1652_s6] ss:$0 sm:$0xff]  ;;  %v1315_v37 = vld [vmem:[%s1649_s3 + $0x8] sm:$0xff]   ;;  %v1319_v41 = vld [vmem:[%s1649_s3 + $0x18] sm:$0xff]  }
  0x1c   :  { %1145 = vmatpush3.bf16.msra.mxu0 %v1299_v5  ;;  %423 = vrot.lane.b32.xlu0 %v1087_v24, %s1371_s21  ;;  %v1313_v33 = vld [vmem:[%s1649_s3] sm:$0xff]   ;;  %v1322_v44 = vld [vmem:[%s1649_s3 + $0x68] sm:$0xff]   ;;  %v1324_v46 = vld [vmem:[%s1649_s3 + $0x70] sm:$0xff]  }
  0x1d   :  { %1146 = vmatprep.subr.bf16.mxu0 %v1300_v6  ;;  %484 = vrot.lane.b32.xlu1 %v1087_v24, %s1372_s4  ;;  %v1320_v42 = vld [vmem:[%s1649_s3 + $0x60] sm:$0xff]   ;;  %v1323_v45 = vld [vmem:[%s1649_s3 + $0x28] sm:$0xff]   ;;  %v1325_v47 = vld [vmem:[%s1649_s3 + $0x30] sm:$0xff]  }
  0x1e   :  { %1211 = vmatpush3.bf16.msra.mxu1 %v1311_v22  ;;  %v1321_v43 = vld [vmem:[%s1649_s3 + $0x20] sm:$0xff]   ;;  %v1326_v48 = vld [vmem:[%s1649_s3 + $0x78] sm:$0xff]   ;;  %v1329_v53 = vld [vmem:[%s1651_s5 + $0x8] sm:$0xff]   ;;  %v1374_v22 = vmov 0.0|0.0  }
  0x1f   :  { %1165 = vmatprep.subr.bf16.mxu1 %v1312_v23  ;;  %v1327_v49 = vld [vmem:[%s1649_s3 + $0x38] sm:$0xff]   ;;  %v291_v50 = vld [vmem:[%s1647_s1] sm:$0xff]  ;;  %vm1590_vm5 = vmpackc.low %vm563_vm3, %vm1375_vm4 }
  0x20   :  { %1147 = vmatpush3.bf16.msra.mxu0 %v1301_v7  ;;  %244 = vrot.lane.b32.xlu0 %v1087_v24, %s1373_s22  ;;  %v293_v51 = vpack.c.bf16 %v291_v50, %v291_v50  ;;  %v1328_v52 = vld [vmem:[%s1651_s5] sm:$0xff]   ;;  %v797_v50 = vld [vmem:[#allocation2 + $0x50] sm:$0xff] }
  0x21   :  { %1148 = vmatprep.subr.bf16.mxu0 %v1302_v8  ;;  %v553_v18 = vld [vmem:[#allocation2] sm:$0xff] }
  0x24   :  { %1149 = vmatpush3.bf16.msra.mxu0 %v1303_v9 }
  0x25   :  { %1150 = vmatprep.subr.bf16.mxu0 %v1304_v10 }
  0x28   :  { %1151 = vmatpush3.bf16.msra.mxu0 %v1305_v12 }
  0x29   :  { %1152 = vmatprep.subr.bf16.mxu0 %v1306_v14 }
  0x2c   :  { %1153 = vmatpush3.bf16.msra.mxu0 %v1307_v15 }
  0x2d   :  { %1154 = vmatprep.subr.bf16.mxu0 %v1308_v16 }
  0x30   :  { %1155 = vmatpush3.bf16.msra.mxu0 %v1309_v17 }
  0x31   :  { %1216 = vmatprep.subr.bf16.mxu0 %v1369_v21 }
  0x33   :  { %219 = vmatmul.mubr.bf16.vlgmr.msra.gmra.mrb[0].mxu0 %v50_v19  ;;  %v554_v19 = vld [vmem:[#allocation2 + $0x8] sm:$0x3] }
  0x34   :  { %1220 = vmatprep.mubr.msk.bf16.mxu0 %vm1370_vm0, %v1369_v21  ;;  %1217 = vmatpush3.bf16.msra.mxu0 %v1328_v52  ;;  %v1267_v20 = vpack.c.bf16 %v554_v19, %v553_v18 }
  0x35   :  { %1218 = vmatprep.subr.bf16.mxu0 %v1369_v21 }
  0x38   :  { %1219 = vmatpush3.bf16.msra.mxu0 %v1329_v53 }
  0x39   :  { %1266 = vmatprep.subr.bf16.mxu0 %v1374_v22 }
  0x8e   :  { %v424_v54 = vpop.permute.xlu0 %423 }
  0x8f   :  { %v485_v6 = vpop.permute.xlu1 %484 }
  0x92   :  { %v245_v55 = vpop.permute.xlu0 %244 }
 0x106   :  { %v1156_v25 = vpop.f32.mrb[0].mxu0 }
 0x107   :  { %v1157_v26 = vpop.f32.mrb[1].mxu0 }
 0x108   :  { %v1158_v27 = vadd.f32 %v1157_v26, %v1156_v25  ;;  %v1159_v28 = vpop.f32.mrb[2].mxu0 }
 0x109   :  { %v1160_v29 = vpop.f32.mrb[3].mxu0 }
 0x10a   :  { %v221_v30 = vadd.f32 %v1158_v27, %v1087_v24 }
 0x10c   :  { %v226_v32 = vmax.f32 %v221_v30, 0.0 }
 0x10e   :  { %v227_v35 = vpack.c.bf16 %v226_v32, %v226_v32  ;;  %v555_v32 = vld [vmem:[#allocation2 + $0x10] sm:$0xff] }
 0x110   :  { %1213 = vmatmul.mubr.msk.bf16.vlgmr.msra.gmra.mrb[0].mxu1 %vm247_vm1, %v227_v35  ;;  %v557_v35 = vld [vmem:[#allocation2 + $0x20] sm:$0xff] }
 0x111   :  { %1166 = vmatpush3.bf16.msra.mxu1 %v1313_v33  ;;  %458 = vmatprep.mubr.bf16.mxu1 %v294_v34  ;;  %v556_v33 = vld [vmem:[#allocation2 + $0x18] sm:$0x3] }
 0x112   :  { %1167 = vmatprep.subr.bf16.mxu1 %v1314_v36  ;;  %v1271_v34 = vpack.c.bf16 %v556_v33, %v555_v32  ;;  %v558_v36 = vld [vmem:[#allocation2 + $0x28] sm:$0xff] }
 0x115   :  { %1168 = vmatpush3.bf16.msra.mxu1 %v1315_v37  ;;  %v1275_v37 = vpack.c.bf16 %v558_v36, %v557_v35 }
 0x116   :  { %1169 = vmatprep.subr.bf16.mxu1 %v1316_v38 }
 0x119   :  { %1170 = vmatpush3.bf16.msra.mxu1 %v1317_v39 }
 0x11a   :  { %1171 = vmatprep.subr.bf16.mxu1 %v1318_v40 }
 0x11d   :  { %1172 = vmatpush3.bf16.msra.mxu1 %v1319_v41 }
 0x11e   :  { %1173 = vmatprep.subr.bf16.mxu1 %v1320_v42 }
 0x121   :  { %1174 = vmatpush3.bf16.msra.mxu1 %v1321_v43  ;;  %v559_v43 = vld [vmem:[#allocation2 + $0x30] sm:$0xf] }
 0x122   :  { %1175 = vmatprep.subr.bf16.mxu1 %v1322_v44  ;;  %v794_v44 = vld [vmem:[#allocation2 + $0x38] sm:$0xf] }
 0x125   :  { %1176 = vmatpush3.bf16.msra.mxu1 %v1323_v45 }
 0x126   :  { %1177 = vmatprep.subr.bf16.mxu1 %v1324_v46 }
 0x129   :  { %1178 = vmatpush3.bf16.msra.mxu1 %v1325_v47 }
 0x12a   :  { %1179 = vmatprep.subr.bf16.mxu1 %v1326_v48  ;;  %v801_v48 = vld [vmem:[%s1653_s7] sm:$0xff]  ;;  %s1376_s7 = smov 20  }
 0x12d   :  { %1180 = vmatpush3.bf16.msra.mxu1 %v1327_v49  ;;  %v795_v49 = vld [vmem:[#allocation2 + $0x40] sm:$0x3] }
 0x12e   :  { %1270 = vmatprep.subr.bf16.mxu1 %v1374_v22 }
 0x130   :  { %459 = vmatmul.mubr.bf16.vlgmr.msra.gmra.mrb[4].mxu1 %v293_v51  ;;  %v798_v51 = vld [vmem:[#allocation2 + $0x58] sm:$0xff] }
 0x131   :  { %1235 = vmatprep.mubr.msk.f32.mxu1 %vm1370_vm0, %v1369_v21  ;;  %1273 = vmatpush3.bf16.msk.msra.mxu1 %vm1590_vm5, %v1271_v34  ;;  %v1278_v52 = vpack.c.bf16 %v798_v51, %v797_v50 }
 0x132   :  { %1247 = vmatprep.subr.mxu1 %v1369_v21 }
 0x1e3   :  { %v285_v56 = vpop.f32.mrb[0].mxu1 }
 0x1e4   :  { %v286_v57 = vadd.f32 %v285_v56, %v245_v55  ;;  %v1214_v58 = vpop.f32.mrb[1].mxu1 }
 0x1e5   :  { %v288_v59 = vpop.f32.mrb[2].mxu1 }
 0x1e6   :  { %1054 = vst.msk [vmem:[%s1655_s9] sm:$0xff] %vm530_vm2, %v286_v57  ;;  %v1215_v60 = vpop.f32.mrb[3].mxu1  ;;  %v531_v61 = vsel %vm530_vm2, %v286_v57, -inf  ;;  %v799_v59 = vld [vmem:[#allocation2 + $0x60] sm:$0xf] }
 0x1e7   :  { %532 = vmax.xlane.f32.xlu1 %v531_v61  ;;  %v1134_v60 = vld [vmem:[#allocation2 + $0x48] ss:$0 sm:$0xff] }
 0x203   :  { %v1181_v62 = vpop.f32.mrb[4].mxu1 }
 0x204   :  { %v1182_v63 = vpop.f32.mrb[5].mxu1 }
 0x205   :  { %v1183_v0 = vadd.f32 %v1182_v63, %v1181_v62  ;;  %v1184_v1 = vpop.f32.mrb[6].mxu1 }
 0x206   :  { %v1185_v2 = vpop.f32.mrb[7].mxu1 }
 0x207   :  { %v461_v3 = vadd.f32 %v1183_v0, %v424_v54 }
 0x209   :  { %v466_v4 = vmax.f32 %v461_v3, 0.0 }
 0x20b   :  { %v467_v5 = vpack.c.bf16 %v466_v4, %v466_v4 }
 0x20d   :  { %1221 = vmatmul.mubr.msk.bf16.vlgmr.msra.gmra.mrb[4].mxu0 %vm247_vm1, %v467_v5 }
 0x20e   :  { %1228 = vmatprep.mubr.msk.f32.mxu0 %vm1370_vm0, %v1369_v21  ;;  %1269 = vmatpush3.bf16.msk.msra.mxu0 %vm1590_vm5, %v1267_v20 }
 0x20f   :  { %1274 = vmatprep.subr.bf16.mxu0 %v1374_v22 }
 0x274   :  { %v533_v7 = vpop.xlane.xlu1 %532 }
 0x275   :  { %v534_v8 = vsub.f32 %v286_v57, %v533_v7 }
 0x277   :  { %v535_v9 = vmul.f32 1.442695, %v534_v8 }
 0x279   :  { %1330 = vpow2.f32 %v535_v9  ;;  %v1139_v9 = vld [vmem:[#allocation2 + $0x68] ss:$0 sm:$0xff] }
 0x283   :  { %v1331_v16 = vpop.eup %1330 }
 0x284   :  { %v537_v17 = vsel %vm530_vm2, %v1331_v16, 0.0 }
 0x2e0   :  { %v524_v10 = vpop.f32.mrb[4].mxu0 }
 0x2e1   :  { %v1584_v11 = vadd.f32 %v524_v10, %v485_v6  ;;  %v1222_v12 = vpop.f32.mrb[5].mxu0 }
 0x2e2   :  { %v527_v13 = vpop.f32.mrb[6].mxu0 }
 0x2e3   :  { %v1223_v14 = vpop.f32.mrb[7].mxu0  ;;  %v542_v15 = vsel %vm530_vm2, %v1584_v11, -inf }
 0x2e4   :  { %543 = vmax.xlane.f32.xlu0 %v542_v15 }
 0x2e8   :  { %538 = vadd.xlane.f32.xlu0 %v537_v17 }
 0x371   :  { %v544_v24 = vpop.xlane.xlu0 %543 }
 0x372   :  { %v545_v25 = vsub.f32 %v1584_v11, %v544_v24 }
 0x374   :  { %v546_v26 = vmul.f32 1.442695, %v545_v25 }
 0x375   :  { %v539_v27 = vpop.xlane.xlu0 %538 }
 0x376   :  { %1332 = vpow2.f32 %v546_v26 }
 0x377   :  { %1334 = vrcp.f32 %v539_v27 }
 0x380   :  { %v1333_v28 = vpop.eup %1332 }
 0x381   :  { %v1335_v29 = vpop.eup %1334  ;;  %v548_v30 = vsel %vm530_vm2, %v1333_v28, 0.0 }
 0x382   :  { %v541_v31 = vmul.f32 %v1335_v29, %v1331_v16  ;;  %549 = vadd.xlane.f32.xlu1 %v548_v30 }
 0x384   :  { %1229 = vmatmul.mubr.msk.f32.vlgmr.msra.gmra.mrb[8].mxu0 %vm530_vm2, %v541_v31 }
 0x385   :  { %1244 = vmatprep.mubr.msk.f32.mxu0 %vm1370_vm0, %v1369_v21  ;;  %1276 = vmatpush3.bf16.msra.mxu0 %v1275_v37 }
 0x386   :  { %1242 = vmatprep.subr.mxu0 %v1369_v21 }
 0x389   :  { %1243 = vmatpush3.msk.msra.mxu0 %vm718_vm6, %v559_v43 }
 0x38a   :  { %1277 = vmatprep.subr.bf16.mxu0 %v1374_v22 }
 0x40f   :  { %v550_v38 = vpop.xlane.xlu1 %549 }
 0x410   :  { %1336 = vrcp.f32 %v550_v38 }
 0x41a   :  { %v1337_v39 = vpop.eup %1336 }
 0x41b   :  { %v552_v40 = vmul.f32 %v1337_v39, %v1333_v28 }
 0x41d   :  { %1236 = vmatmul.mubr.msk.f32.vlgmr.msra.gmra.mrb[8].mxu1 %vm530_vm2, %v552_v40 }
 0x41e   :  { %1249 = vmatprep.mubr.msk.f32.mxu1 %vm1370_vm0, %v1369_v21  ;;  %1248 = vmatpush3.msk.msra.mxu1 %vm718_vm6, %v794_v44 }
 0x41f   :  { %1252 = vmatprep.subr.mxu1 %v1369_v21 }
 0x421   :  { %1250 = vmatmul.mubr.msk.f32.vlgmr.msra.gmra.mrb[10].mxu1 %vm802_vm8, %v801_v48 }
 0x422   :  { %1254 = vmatprep.mubr.msk.f32.mxu1 %vm1370_vm0, %v1369_v21  ;;  %1253 = vmatpush3.msk.msra.mxu1 %vm563_vm3, %v795_v49 }
 0x457   :  { %v633_v41 = vpop.f32.mrb[8].mxu0 }
 0x458   :  { %v1230_v42 = vpop.f32.mrb[9].mxu0 }
 0x4f0   :  { %v709_v45 = vpop.f32.mrb[8].mxu1 }
 0x4f1   :  { %v713_v46 = vmul.f32 %v709_v45, %v633_v41  ;;  %v1237_v47 = vpop.f32.mrb[9].mxu1 }
 0x4f3   :  { %1245 = vmatmul.mubr.msk.f32.vlgmr.msra.gmra.mrb[10].mxu0 %vm714_vm7, %v713_v46 }
 0x4f4   :  { %1263 = vmatprep.mubr.msk.f32.mxu0 %vm1370_vm0, %v1369_v21  ;;  %1279 = vmatpush3.bf16.msra.mxu0 %v1278_v52  ;;  %v875_v57 = vpop.f32.mrb[10].mxu1 }
 0x4f5   :  { %1261 = vmatprep.subr.mxu0 %v1369_v21  ;;  %v1251_v58 = vpop.f32.mrb[11].mxu1 }
 0x4f8   :  { %1262 = vmatpush3.msk.msra.mxu0 %vm718_vm6, %v799_v59 }
 0x5c6   :  { %v788_v53 = vpop.f32.mrb[10].mxu0 }
 0x5c7   :  { %v792_v54 = vmax.f32 %v788_v53, 0.0  ;;  %v1246_v55 = vpop.f32.mrb[11].mxu0 }
 0x5c9   :  { %v793_v56 = vmin.f32 %v792_v54, 1.0 }
 0x5cb   :  { %1061 = vrot.lane.b32.xlu1 %v793_v56, %s1376_s7  ;;  %1255 = vmatmul.mubr.msk.f32.vlgmr.msra.gmra.mrb[12].mxu1 %vm883_vm9, %v793_v56 }
 0x63d   :  { %v1062_v7 = vpop.permute.xlu1 %1061 }
 0x69e   :  { %v956_v61 = vpop.f32.mrb[12].mxu1 }
 0x69f   :  { %v957_v62 = vadd.f32 %v1134_v60, %v956_v61  ;;  %v1256_v63 = vpop.f32.mrb[13].mxu1 }
 0x6a1   :  { %v960_v0 = vmul.f32 %v957_v62, %v875_v57 }
 0x6a3   :  { %1264 = vmatmul.mubr.msk.f32.vlgmr.msra.gmra.mrb[12].mxu0 %vm714_vm7, %v960_v0 }
 0x776   :  { %v1033_v1 = vpop.f32.mrb[12].mxu0 }
 0x777   :  { %v1265_v2 = vpop.f32.mrb[13].mxu0  ;;  %v1037_v3 = vsel %vm802_vm8, %v1033_v1, 0.0 }
 0x778   :  { %1038 = vadd.xlane.f32.xlu0 %v1037_v3 }
 0x78e   :  { %1056 = vrot.lane.b32.xlu0 %v1584_v11, %s1377_s13 }
 0x805   :  { %v1039_v4 = vpop.xlane.xlu0 %1038 }
 0x806   :  { %v1040_v5 = vadd.f32 1e-05, %v1039_v4 }
 0x808   :  { %1338 = vrcp.f32 %v1040_v5 }
 0x809   :  { %v1057_v6 = vpop.permute.xlu0 %1056 }
 0x80a   :  { %1060 = vst.msk [vmem:[%s1655_s9] sm:$0xff] %vm1059_vm10, %v1057_v6 }
 0x80b   :  { %1065 = vst.msk [vmem:[%s1655_s9] sm:$0xff] %vm1064_vm11, %v1062_v7 }
 0x812   :  { %v1339_v8 = vpop.eup %1338 }
 0x813   :  { %v1042_v10 = vmul.f32 %v1339_v8, %v1033_v1 }
 0x815   :  { %1073 = vrot.lane.b32.xlu0 %v1042_v10, %s1378_s17  ;;  %v1050_v11 = vmul.f32 %v1139_v9, %v1042_v10  ;;  %v1043_v12 = vadd.f32 1e-05, %v1042_v10 }
 0x817   :  { %v1051_v13 = vsel %vm802_vm8, %v1050_v11, 0.0  ;;  %1340 = vlog2.f32 %v1043_v12 }
 0x818   :  { %1052 = vadd.xlane.f32.xlu1 %v1051_v13 }
 0x821   :  { %v1341_v14 = vpop.eup %1340 }
 0x822   :  { %v1045_v15 = vmul.f32 0.6931472, %v1341_v14 }
 0x829   :  { %1067 = vrot.lane.b32.xlu1 %v1045_v15, %s1379_s0 }
 0x887   :  { %v1074_v18 = vpop.permute.xlu0 %1073 }
 0x8a5   :  { %v1053_v16 = vpop.xlane.xlu1 %1052 }
 0x8a9   :  { %v1068_v17 = vpop.permute.xlu1 %1067 }
 0x8aa   :  { %1071 = vst.msk [vmem:[%s1655_s9] sm:$0xff] %vm1070_vm12, %v1068_v17 }
 0x8ab   :  { %1077 = vst.msk [vmem:[%s1655_s9] sm:$0xff] %vm1076_vm13, %v1074_v18 }
 0x8ac   :  { %1079 = vst.msk [vmem:[%s1655_s9] sm:$0xff] %vm1078_vm14, %v1053_v16 }
 0x8ad   :  { %1081 = vst.msk [vmem:[%s1655_s9] sm:$0xff] %vm1080_vm15, %v1369_v21 }
 0x8ae   :  { %1086 = vsyncpa [#allocation3], 1 }

</bundles_post_ra>
